<compile_context>
chip_gen: v7x
topology: tpu7x:2x2x1
jax: 0.10.0
libtpu: 0.0.40
codegen_flags: <defaults>
</compile_context>

<pallas_src>
import functools

import jax
import jax.numpy as jnp
from jax.experimental import pallas as pl
from jax.experimental.pallas import tpu as pltpu

EPS = 1e-5


def _cnn_block_kernel(patches_ref, w_ref, gamma_ref, beta_ref, o_ref,
                      *, num_groups, group_size):
    # patches_ref: (1, KKC_pad, HW), w_ref: (Cout, KKC_pad)
    # --- convolution as matmul (MXU): (Cout, KKC) @ (KKC, HW) -> (Cout, HW) ---
    acc = jnp.dot(w_ref[...], patches_ref[0],
                  preferred_element_type=jnp.float32)           # (Cout, HW)
    # --- ReLU (lane-dense VPU) ---
    acc = jnp.maximum(acc, 0.0)

    gamma = gamma_ref[...]                                      # (Cout, 1)
    beta = beta_ref[...]                                        # (Cout, 1)
    hw = acc.shape[1]
    inv_n = 1.0 / float(group_size * hw)

    # --- GroupNorm: per-sample stats over (group channels x HW), fused as a
    #     per-channel scale/bias; static unroll over the (small) group count ---
    parts = []
    for g in range(num_groups):
        lo = g * group_size
        acc_g = acc[lo:lo + group_size, :]                       # (gs, HW)
        # two-pass mean/variance (avoids E[x^2]-E[x]^2 cancellation)
        row_sum = jnp.sum(acc_g, axis=1, keepdims=True)          # (gs, 1) lane reduce
        mean = jnp.sum(row_sum, axis=0, keepdims=True) * inv_n   # (1, 1)
        centered = acc_g - mean                                  # (gs, HW)
        sq_sum = jnp.sum(centered * centered, axis=1, keepdims=True)
        var = jnp.sum(sq_sum, axis=0, keepdims=True) * inv_n     # (1, 1)
        inv = jax.lax.rsqrt(var + EPS)                           # (1, 1)
        scale = gamma[lo:lo + group_size, :] * inv               # (gs, 1)
        parts.append(centered * scale + beta[lo:lo + group_size, :])
    y = parts[0] if num_groups == 1 else jnp.concatenate(parts, axis=0)

    # Dropout: identity (eval mode).  Single lane-dense store of (Cout, HW).
    o_ref[0] = y.astype(o_ref.dtype)


def cnn_blocks_forward(x_nchw, weight_oihw, gamma, beta, *, padding, num_groups):
    """Conv2d(bias=False) -> ReLU -> GroupNorm -> Dropout(eval) on NCHW input."""
    B, Cin, H, W = x_nchw.shape
    Cout, Cin_w, K, _ = weight_oihw.shape
    assert Cin_w == Cin
    assert Cout % num_groups == 0
    group_size = Cout // num_groups
    HW = H * W
    KKC = K * K * Cin
    KKC_pad = ((KKC + 7) // 8) * 8        # sublane-align the contraction dim

    # ---- glue: im2col directly in NCHW -> (B, KKC, HW); KKC order = (kh, kw, cin) ----
    xp = jnp.pad(x_nchw.astype(jnp.float32),
                 ((0, 0), (0, 0), (padding, padding), (padding, padding)))
    cols = []
    for kh in range(K):
        for kw in range(K):
            cols.append(xp[:, :, kh:kh + H, kw:kw + W])          # (B, Cin, H, W)
    patches = jnp.concatenate(cols, axis=1).reshape(B, KKC, HW)  # (B, KKC, HW)
    if KKC_pad != KKC:
        patches = jnp.pad(patches, ((0, 0), (0, KKC_pad - KKC), (0, 0)))

    # ---- glue: weight (Cout,Cin,K,K) -> (Cout, KKC) matching (kh, kw, cin) order ----
    w_flat = jnp.transpose(weight_oihw, (0, 2, 3, 1)).reshape(Cout, KKC)
    w_flat = w_flat.astype(jnp.float32)
    if KKC_pad != KKC:
        w_flat = jnp.pad(w_flat, ((0, 0), (0, KKC_pad - KKC)))

    gamma2 = gamma.reshape(Cout, 1).astype(jnp.float32)
    beta2 = beta.reshape(Cout, 1).astype(jnp.float32)

    kernel = functools.partial(_cnn_block_kernel,
                               num_groups=num_groups, group_size=group_size)

    cost = pl.CostEstimate(
        flops=2 * B * Cout * HW * KKC_pad + 8 * B * Cout * HW,
        transcendentals=B * num_groups,
        bytes_accessed=4 * (B * KKC_pad * HW + Cout * KKC_pad
                            + 2 * Cout + B * Cout * HW),
    )

    out_flat = pl.pallas_call(
        kernel,
        out_shape=jax.ShapeDtypeStruct((B, Cout, HW), jnp.float32),
        grid_spec=pltpu.PrefetchScalarGridSpec(
            num_scalar_prefetch=0,
            grid=(B,),
            in_specs=[
                pl.BlockSpec((1, KKC_pad, HW), lambda b: (b, 0, 0)),
                pl.BlockSpec((Cout, KKC_pad), lambda b: (0, 0)),
                pl.BlockSpec((Cout, 1), lambda b: (0, 0)),
                pl.BlockSpec((Cout, 1), lambda b: (0, 0)),
            ],
            out_specs=pl.BlockSpec((1, Cout, HW), lambda b: (b, 0, 0)),
        ),
        compiler_params=pltpu.CompilerParams(
            dimension_semantics=("parallel",)),
        cost_estimate=cost,
    )(patches, w_flat, gamma2, beta2)

    # ---- glue: (B, Cout, HW) is already channels-first; just reshape ----
    return out_flat.reshape(B, Cout, H, W)


def _reference(x_nchw, weight_oihw, gamma, beta, *, padding, num_groups):
    """Pure-JAX reference of the PyTorch forward (eval mode)."""
    y = jax.lax.conv_general_dilated(
        x_nchw, weight_oihw, window_strides=(1, 1),
        padding=[(padding, padding), (padding, padding)],
        dimension_numbers=("NCHW", "OIHW", "NCHW"))
    y = jnp.maximum(y, 0.0)
    B, C, H, W = y.shape
    yg = y.reshape(B, num_groups, C // num_groups, H, W)
    mean = yg.mean(axis=(2, 3, 4), keepdims=True)
    var = ((yg - mean) ** 2).mean(axis=(2, 3, 4), keepdims=True)
    yn = ((yg - mean) / jnp.sqrt(var + EPS)).reshape(B, C, H, W)
    return yn * gamma.reshape(1, C, 1, 1) + beta.reshape(1, C, 1, 1)


if __name__ == "__main__":
    # CNNBlocks(in_channels=4, out_channels=8, kernel_size=3, padding=1,
    #           dropout_value=0.1, norm_type='Group')
    B, Cin, H, W = 2, 4, 16, 16
    Cout, K, pad = 8, 3, 1
    num_groups = Cout // 4           # GroupNorm(out_channels/4, out_channels)

    key = jax.random.PRNGKey(0)
    kx, kw = jax.random.split(key)
    x = jax.random.normal(kx, (B, Cin, H, W), dtype=jnp.float32)
    # deterministic conv weight (kaiming-ish scale), no bias
    fan_in = Cin * K * K
    weight = jax.random.normal(kw, (Cout, Cin, K, K), dtype=jnp.float32) / jnp.sqrt(fan_in)
    gamma = jnp.ones((Cout,), dtype=jnp.float32)   # PyTorch GroupNorm init
    beta = jnp.zeros((Cout,), dtype=jnp.float32)

    out = cnn_blocks_forward(x, weight, gamma, beta,
                             padding=pad, num_groups=num_groups)
    out = jax.block_until_ready(out)

    ref = _reference(x, weight, gamma, beta, padding=pad, num_groups=num_groups)
    assert out.shape == (B, Cout, H, W)
    assert jnp.allclose(out, ref, rtol=1e-4, atol=1e-4), float(jnp.abs(out - ref).max())

    print("KERNEL_OK")
</pallas_src>

<mosaic_0001>
module attributes {stable_mosaic.version = 11 : i64} {
  func.func @_cnn_block_kernel(%arg0: i32, %arg1: memref<1x40x256xf32, #tpu.memory_space<vmem>>, %arg2: memref<8x40xf32, #tpu.memory_space<vmem>>, %arg3: memref<8x1xf32, #tpu.memory_space<vmem>>, %arg4: memref<8x1xf32, #tpu.memory_space<vmem>>, %arg5: memref<1x8x256xf32, #tpu.memory_space<vmem>>) attributes {dimension_semantics = [#tpu.dimension_semantics<parallel>], iteration_bounds = array<i64: 2>, scalar_prefetch = 0 : i64, scratch_operands = 0 : i64, tpu.core_type = #tpu.core_type<tc>, window_params = [{transform_indices = @transform_0, window_bounds = array<i64: 1, 40, 256>}, {pipeline_mode = #tpu.pipeline_mode<synchronous>, transform_indices = @transform_1, window_bounds = array<i64: 8, 40>}, {pipeline_mode = #tpu.pipeline_mode<synchronous>, transform_indices = @transform_2, window_bounds = array<i64: 8, 1>}, {pipeline_mode = #tpu.pipeline_mode<synchronous>, transform_indices = @transform_3, window_bounds = array<i64: 8, 1>}, {transform_indices = @transform_4, window_bounds = array<i64: 1, 8, 256>}]} {
    %c0 = arith.constant 0 : index
    %c0_0 = arith.constant 0 : index
    %0 = vector.load %arg2[%c0, %c0_0] : memref<8x40xf32, #tpu.memory_space<vmem>>, vector<8x40xf32>
    %c0_1 = arith.constant 0 : index
    %c0_2 = arith.constant 0 : index
    %c0_3 = arith.constant 0 : index
    %1 = vector.load %arg1[%c0_1, %c0_2, %c0_3] : memref<1x40x256xf32, #tpu.memory_space<vmem>>, vector<1x40x256xf32>
    %2 = vector.shape_cast %1 : vector<1x40x256xf32> to vector<40x256xf32>
    %cst = arith.constant dense<0.000000e+00> : vector<8x256xf32>
    %3 = tpu.matmul %0, %2, %cst {dimension_numbers = #tpu.dot_dimension_numbers<[1], [0], [0], [1], [0, 0, 1, 1], [], []>} : vector<8x40xf32>, vector<40x256xf32>, vector<8x256xf32> -> vector<8x256xf32>
    %cst_4 = arith.constant 0.000000e+00 : f32
    %4 = vector.broadcast %cst_4 : f32 to vector<8x256xf32>
    %5 = arith.maximumf %3, %4 : vector<8x256xf32>
    %c0_5 = arith.constant 0 : index
    %c0_6 = arith.constant 0 : index
    %6 = vector.load %arg3[%c0_5, %c0_6] : memref<8x1xf32, #tpu.memory_space<vmem>>, vector<8x1xf32>
    %c0_7 = arith.constant 0 : index
    %c0_8 = arith.constant 0 : index
    %7 = vector.load %arg4[%c0_7, %c0_8] : memref<8x1xf32, #tpu.memory_space<vmem>>, vector<8x1xf32>
    %8 = vector.extract_strided_slice %5 {offsets = [0, 0], sizes = [4, 256], strides = [1, 1]} : vector<8x256xf32> to vector<4x256xf32>
    %cst_9 = arith.constant dense<0.000000e+00> : vector<4xf32>
    %9 = vector.multi_reduction <add>, %8, %cst_9 [1] : vector<4x256xf32> to vector<4xf32>
    %10 = vector.shape_cast %9 : vector<4xf32> to vector<4x1xf32>
    %cst_10 = arith.constant dense<0.000000e+00> : vector<1xf32>
    %11 = vector.multi_reduction <add>, %10, %cst_10 [0] : vector<4x1xf32> to vector<1xf32>
    %12 = vector.shape_cast %11 : vector<1xf32> to vector<1x1xf32>
    %cst_11 = arith.constant 9.765625E-4 : f32
    %13 = vector.broadcast %cst_11 : f32 to vector<1x1xf32>
    %14 = arith.mulf %12, %13 : vector<1x1xf32>
    %15 = vector.broadcast %14 : vector<1x1xf32> to vector<4x256xf32>
    %16 = arith.subf %8, %15 : vector<4x256xf32>
    %17 = arith.mulf %16, %16 : vector<4x256xf32>
    %cst_12 = arith.constant dense<0.000000e+00> : vector<4xf32>
    %18 = vector.multi_reduction <add>, %17, %cst_12 [1] : vector<4x256xf32> to vector<4xf32>
    %19 = vector.shape_cast %18 : vector<4xf32> to vector<4x1xf32>
    %cst_13 = arith.constant dense<0.000000e+00> : vector<1xf32>
    %20 = vector.multi_reduction <add>, %19, %cst_13 [0] : vector<4x1xf32> to vector<1xf32>
    %21 = vector.shape_cast %20 : vector<1xf32> to vector<1x1xf32>
    %cst_14 = arith.constant 9.765625E-4 : f32
    %22 = vector.broadcast %cst_14 : f32 to vector<1x1xf32>
    %23 = arith.mulf %21, %22 : vector<1x1xf32>
    %cst_15 = arith.constant 9.99999974E-6 : f32
    %24 = vector.broadcast %cst_15 : f32 to vector<1x1xf32>
    %25 = arith.addf %23, %24 : vector<1x1xf32>
    %26 = math.rsqrt %25 : vector<1x1xf32>
    %27 = vector.extract_strided_slice %6 {offsets = [0, 0], sizes = [4, 1], strides = [1, 1]} : vector<8x1xf32> to vector<4x1xf32>
    %28 = vector.broadcast %26 : vector<1x1xf32> to vector<4x1xf32>
    %29 = arith.mulf %27, %28 : vector<4x1xf32>
    %30 = vector.broadcast %29 : vector<4x1xf32> to vector<4x256xf32>
    %31 = arith.mulf %16, %30 : vector<4x256xf32>
    %32 = vector.extract_strided_slice %7 {offsets = [0, 0], sizes = [4, 1], strides = [1, 1]} : vector<8x1xf32> to vector<4x1xf32>
    %33 = vector.broadcast %32 : vector<4x1xf32> to vector<4x256xf32>
    %34 = arith.addf %31, %33 : vector<4x256xf32>
    %35 = vector.extract_strided_slice %5 {offsets = [4, 0], sizes = [4, 256], strides = [1, 1]} : vector<8x256xf32> to vector<4x256xf32>
    %cst_16 = arith.constant dense<0.000000e+00> : vector<4xf32>
    %36 = vector.multi_reduction <add>, %35, %cst_16 [1] : vector<4x256xf32> to vector<4xf32>
    %37 = vector.shape_cast %36 : vector<4xf32> to vector<4x1xf32>
    %cst_17 = arith.constant dense<0.000000e+00> : vector<1xf32>
    %38 = vector.multi_reduction <add>, %37, %cst_17 [0] : vector<4x1xf32> to vector<1xf32>
    %39 = vector.shape_cast %38 : vector<1xf32> to vector<1x1xf32>
    %cst_18 = arith.constant 9.765625E-4 : f32
    %40 = vector.broadcast %cst_18 : f32 to vector<1x1xf32>
    %41 = arith.mulf %39, %40 : vector<1x1xf32>
    %42 = vector.broadcast %41 : vector<1x1xf32> to vector<4x256xf32>
    %43 = arith.subf %35, %42 : vector<4x256xf32>
    %44 = arith.mulf %43, %43 : vector<4x256xf32>
    %cst_19 = arith.constant dense<0.000000e+00> : vector<4xf32>
    %45 = vector.multi_reduction <add>, %44, %cst_19 [1] : vector<4x256xf32> to vector<4xf32>
    %46 = vector.shape_cast %45 : vector<4xf32> to vector<4x1xf32>
    %cst_20 = arith.constant dense<0.000000e+00> : vector<1xf32>
    %47 = vector.multi_reduction <add>, %46, %cst_20 [0] : vector<4x1xf32> to vector<1xf32>
    %48 = vector.shape_cast %47 : vector<1xf32> to vector<1x1xf32>
    %cst_21 = arith.constant 9.765625E-4 : f32
    %49 = vector.broadcast %cst_21 : f32 to vector<1x1xf32>
    %50 = arith.mulf %48, %49 : vector<1x1xf32>
    %cst_22 = arith.constant 9.99999974E-6 : f32
    %51 = vector.broadcast %cst_22 : f32 to vector<1x1xf32>
    %52 = arith.addf %50, %51 : vector<1x1xf32>
    %53 = math.rsqrt %52 : vector<1x1xf32>
    %54 = vector.extract_strided_slice %6 {offsets = [4, 0], sizes = [4, 1], strides = [1, 1]} : vector<8x1xf32> to vector<4x1xf32>
    %55 = vector.broadcast %53 : vector<1x1xf32> to vector<4x1xf32>
    %56 = arith.mulf %54, %55 : vector<4x1xf32>
    %57 = vector.broadcast %56 : vector<4x1xf32> to vector<4x256xf32>
    %58 = arith.mulf %43, %57 : vector<4x256xf32>
    %59 = vector.extract_strided_slice %7 {offsets = [4, 0], sizes = [4, 1], strides = [1, 1]} : vector<8x1xf32> to vector<4x1xf32>
    %60 = vector.broadcast %59 : vector<4x1xf32> to vector<4x256xf32>
    %61 = arith.addf %58, %60 : vector<4x256xf32>
    %62 = tpu.concatenate %34, %61 in 0 : vector<4x256xf32>, vector<4x256xf32> -> vector<8x256xf32>
    %c0_23 = arith.constant 0 : index
    %c0_24 = arith.constant 0 : index
    %c0_25 = arith.constant 0 : index
    %63 = vector.load %arg5[%c0_23, %c0_24, %c0_25] : memref<1x8x256xf32, #tpu.memory_space<vmem>>, vector<1x8x256xf32>
    %64 = vector.shape_cast %63 : vector<1x8x256xf32> to vector<8x256xf32>
    %65 = vector.shape_cast %62 : vector<8x256xf32> to vector<1x8x256xf32>
    tpu.vector_store %arg5[%c0_23, %c0_24, %c0_25], %65 {strides = array<i32>} : memref<1x8x256xf32, #tpu.memory_space<vmem>>, vector<1x8x256xf32>,
    return
  }
  func.func @transform_0(%arg0: i32) -> (i32, i32, i32) {
    %c0_i32 = arith.constant 0 : i32
    %c0_i32_0 = arith.constant 0 : i32
    %c0_i32_1 = arith.constant 0 : i32
    return %arg0, %c0_i32, %c0_i32_0 : i32, i32, i32
  }
  func.func @transform_1(%arg0: i32) -> (i32, i32) {
    %c0_i32 = arith.constant 0 : i32
    %c0_i32_0 = arith.constant 0 : i32
    %c0_i32_1 = arith.constant 0 : i32
    return %c0_i32, %c0_i32_0 : i32, i32
  }
  func.func @transform_2(%arg0: i32) -> (i32, i32) {
    %c0_i32 = arith.constant 0 : i32
    %c0_i32_0 = arith.constant 0 : i32
    %c0_i32_1 = arith.constant 0 : i32
    return %c0_i32, %c0_i32_0 : i32, i32
  }
  func.func @transform_3(%arg0: i32) -> (i32, i32) {
    %c0_i32 = arith.constant 0 : i32
    %c0_i32_0 = arith.constant 0 : i32
    %c0_i32_1 = arith.constant 0 : i32
    return %c0_i32, %c0_i32_0 : i32, i32
  }
  func.func @transform_4(%arg0: i32) -> (i32, i32, i32) {
    %c0_i32 = arith.constant 0 : i32
    %c0_i32_0 = arith.constant 0 : i32
    %c0_i32_1 = arith.constant 0 : i32
    return %arg0, %c0_i32, %c0_i32_0 : i32, i32, i32
  }
}

</mosaic_0001>

<bundles_post_ra>
// kernel: tpu_custom_call.1
= control target key start
LH: loop header
LB: loop body
LE: loop exit
PB: predicated region body
PF: predicated region fallthrough
CT: control target
= control target key end

     0   :  { %9 = vsyncpa [#allocation3], 0  ;;  %s879_s0 = inlined_call_operand.hbm [shape: f32[2,40,256], index: 0, kind: input, shape index: {}]   ;;  %s880_s1 = inlined_call_operand.vmem [shape: f32[8,40], index: 1, kind: input, shape index: {}]   ;;  %s881_s2 = inlined_call_operand.vmem [shape: f32[8,1], index: 2, kind: input, shape index: {}]   ;;  %s882_s3 = inlined_call_operand.vmem [shape: f32[8,1], index: 3, kind: input, shape index: {}]   ;;  %s883_s4 = inlined_call_operand.hbm [shape: f32[2,8,256], index: 4, kind: output, shape index: {}]  }
   0x1   :  { %11 = vsyncpa [#allocation3 + $0x1], 0 }
   0x2   :  { %12 = vsyncpa [#allocation4], 0 }
   0x3   :  { %14 = vsyncpa [#allocation4 + $0x1], 0  ;;  %s701_s15 = smov 0   ;;  %s703_s16 = smov 0  }
   0x4   :  { %s705_s17 = smov 0   ;;  %s707_s18 = smov 0  }
   0x5 LB: > { %s722_s19 = sadd.s32 4294967295, %s668_s18   ;;  %s492_s20 = sadd.s32 4294967294, %s668_s18   ;;  %s668_s18 = sphi %s707_s18, %s895_s18   ;;  %s664_s17 = sphi %s705_s17, %s894_s17   ;;  %s660_s16 = sphi %s703_s16, %s893_s16   ;;  %s656_s15 = sphi %s701_s15, %s892_s15  }
   0x6   : > { %s726_s21 = sadd.s32 1, %s668_s18   ;;  %s27_s22 = sadd.s32 1, %s664_s17 }
   0x7   : > { %s24_s23 = ssub.s32 %s668_s18, %s726_s21  ;;  %p34_p0 = scmp.ne.s32.totalorder %s664_s17, %s660_s16 }
   0x8   : > { %p25_p1 = scmp.eq.s32.totalorder %s24_s23, 0  ;;  %p35_p2 = scmp.eq.s32.totalorder %s668_s18, 0 }
   0x9   : > { %p40_p3 = scmp.ne.s32.totalorder %s660_s16, %s656_s15  ;;  %p41_p4 = scmp.eq.s32.totalorder %s722_s19, 0 }
   0xa   : > { %s738_s24 = scalar_select %p25_p1, %s664_s17, %s27_s22  }
   0xb   : > { %p36_p5 = por %p35_p2, %p34_p0  ;;  %p740_p6 = por %p41_p4, %p40_p3 }
   0xc   : > { %p127_p7 = scmp.eq.s32.totalorder %s722_s19, 1  ;;  %p133_p8 = scmp.eq.s32.totalorder %s492_s20, 1 }
   0xd   : > { %p528_p10 = scmp.lt.s32.totalorder %s668_s18, 2  ;;  %s162_s28 = sand.u32 1, %s664_s17  }
   0xe   : > { %p747_p11 = por %p127_p7, %p34_p0  ;;  %p751_p12 = por %p133_p8, %p40_p3 }
   0xf   : > { %s514_s29 = smul.u32 1280, %s668_s18  ;;  %p762_p13 = pnand %p528_p10, %p36_p5 }
  0x10   : > { %s886_s26 = scalar_select %p747_p11, 1, 0 }
  0x11   : > { %s887_s27 = scalar_select %p751_p12, 1, 0 }
  0x12   : > { %s513_s30 = smul.u32 80, %s162_s28  ;;  %s760_s7 = scalar_lea.hbm %s879_s0, %s514_s29 }
  0x13   : > { %s768_s11 = scalar_lea.sflag [#allocation3], %s162_s28  ;;  %s572_s12 = scalar_lea.hbm %s760_s7, 1280 }
  0x14   : > { %s166_s9 = scalar_lea.vmem [#allocation2], %s513_s30  ;;  %p573_p0 = scmp.ne.s32.totalorder %s760_s7, %s572_s12 }
  0x15   : > { %s173_s10 = sshll.u32 %s166_s9, 4  ;;  %p574_p1 = pneg %p762_p13  ;;  %s766_s10 = int_to_ptr.vmem [resolvable:$true] %s173_s10 }
  0x16   : > { %s577_s20 = scalar_lea.hbm %s879_s0, 2560  ;;  %p578_p4 = scmp.lt.u32.totalorder %s760_s7, %s879_s0 }
  0x17   : > { %p575_p2 = pnand %p574_p1, %p573_p0  ;;  %p579_p5 = scmp.lt.u32.totalorder %s577_s20, %s572_s12 }
  0x18   : > { %p581_p8 = scmp.lt.u32.totalorder %s572_s12, %s760_s7 }
  0x19   : > { %p576_p3 = pneg %p575_p2  ;;  %p580_p7 = por %p579_p5, %p578_p4 }
  0x1b   : > { %p582_p10 = por %p581_p8, %p580_p7 }
  0x1d   : > { %p583_p9 = pnand %p582_p10, %p576_p3 }
  0x1f   : > { %586 = shalt.err (!%p583_p9)
}
  0x20   : > { %s587_s28 = scalar_lea.vmem %s766_s10, 1280  ;;  %s670_s29 = smov [#allocation2]  }
  0x21   : > { %p588_p0 = scmp.ne.s32.totalorder %s766_s10, %s587_s28  ;;  %s592_s30 = sshll.u32 %s670_s29, 4  ;;  %s593_s30 = int_to_ptr.vmem [resolvable:$false] %s592_s30 }
  0x22   : > { %s594_s5 = scalar_lea.vmem %s593_s30, 2560  ;;  %p595_p11 = scmp.lt.s32.totalorder %s766_s10, %s593_s30 }
  0x23   : > { %p590_p2 = pnand %p588_p0, %p574_p1  ;;  %p596_p4 = scmp.lt.s32.totalorder %s594_s5, %s587_s28 }
  0x25   : > { %p591_p12 = pneg %p590_p2  ;;  %p597_p5 = por %p596_p4, %p595_p11 }
  0x27   : > { %p598_p7 = pnand %p597_p5, %p591_p12 }
  0x29   : > { %601 = shalt.err (!%p598_p7)
}
  0x2a   : > { %s671_s6 = smov 256   ;;  %s672_s9 = smov 16  }
  0x2b   : > { %523 = dma.hbm_to_vmem [thread:$0]  (!%p762_p13), %s760_s7, 1280, %s766_s10, %s768_s11, %s671_s6, %s671_s6, %s672_s9  }
  0x2c   : > { %p496_p9 = scmp.ge.s32.totalorder %s668_s18, 1  ;;  %p181_p1 = scmp.lt.s32.totalorder %s668_s18, 3 }
  0x2e   : > { %p182_p3 = pnand %p496_p9, %p181_p1 }
  0x2f   : > { %s799_s12 = sand.u32 (!%p182_p3), 1, %s660_s16  }
  0x30   : > { %185 = sbr.rel (%p182_p3) target bundleno = 776 (0x308), region = 36  ;;  %s188_s14 = scalar_lea.sflag (!%p182_p3), [#allocation3], %s799_s12 }
  0x31   : > { %s515_s13 = smul.u32 (!%p182_p3), 80, %s799_s12 }
  0x33   : > { %s191_s20 = scalar_lea.vmem (!%p182_p3), [#allocation2], %s515_s13 }
  0x37   : > { %647 = dma.done.wait (%p740_p6), %s188_s14, 1280  }
  0x38   : > { %649 = vsyncadd (%p740_p6), %s188_s14, 4294966016  ;;  %v673_v0 = vmov 0.0   ;;  %v218_v1 = vld [vmem:[%s191_s20 + $0x8] sm:$0xff]  ;;  %v220_v2 = vld [vmem:[%s191_s20 + $0x18] sm:$0xff]  ;;  %vm227_vm0 = vcmask 326656   ;;  %vm354_vm1 = vcmask 1047556  }
  0x39   : > { %295 = vmatprep.mubr.f32.mxu0 %v673_v0  ;;  %v217_v3 = vld [vmem:[%s191_s20] sm:$0xff]  ;;  %v505_v4 = vpack.c.bf16 %v220_v2, %v218_v1  ;;  %v219_v5 = vld [vmem:[%s191_s20 + $0x10] sm:$0xff]  ;;  %v222_v6 = vld [vmem:[%s191_s20 + $0x28] sm:$0xff]  ;;  %vm306_vm2 = vcmask 1043456   ;;  %v674_v59 = vmov 0   ;;  %s497_s23 = sshll.u32 %s799_s12, 4 }
  0x3a   : > { %v224_v7 = vld [vmem:[%s191_s20 + $0x38] sm:$0xff]  ;;  %v507_v8 = vpack.c.bf16 %v219_v5, %v217_v3  ;;  %v221_v10 = vld [vmem:[%s191_s20 + $0x20] sm:$0xff]  ;;  %v223_v11 = vld [vmem:[%s191_s20 + $0x30] sm:$0xff]  ;;  %567 = vset.pattern.permute.xlu1 %v674_v59  ;;  %566 = vset.pattern.permute.xlu0 %v674_v59  ;;  %s504_s28 = sshll.u32 %s722_s19, 8  ;;  %s215_s29 = scalar_lea.vmem [#allocation5], %s497_s23 }
  0x3b   : > { %v509_v9 = vpack.c.bf16 %v224_v7, %v222_v6  ;;  %506 = vmatprep.subr.bf16.mxu0 %v505_v4  ;;  %v511_v12 = vpack.c.bf16 %v223_v11, %v221_v10  ;;  %v226_v13 = vld [vmem:[%s191_s20 + $0x48] sm:$0xff]  ;;  %v225_v14 = vld [vmem:[%s191_s20 + $0x40] sm:$0xff]  ;;  %s422_s30 = sshll.u32 %s215_s29, 4  ;;  %s833_s9 = scalar_lea.hbm %s883_s4, %s504_s28  ;;  %s835_s30 = int_to_ptr.vmem [resolvable:$true] %s422_s30 }
  0x3c   : > { %508 = vmatpush1.bf16.msra.mxu0 %v507_v8  ;;  %v216_v15 = vld [vmem:[%s880_s1] sm:$0xff]  ;;  %s408_s19 = scalar_lea.sflag [#allocation4], %s799_s12  ;;  %s602_s13 = scalar_lea.vmem %s835_s30, 256 }
  0x3d   : > { %510 = vmatprep.subr.bf16.mxu0 %v509_v9  ;;  %p603_p6 = scmp.ne.s32.totalorder %s835_s30, %s602_s13  ;;  %p889_p11 = scmp.ne.s32.totalorder %s886_s26, 0 }
  0x3e   : > { %s675_s14 = smov [#allocation5]  }
  0x3f   : > { %p604_p12 = pnand %p603_p6, %p889_p11  ;;  %s606_s20 = sshll.u32 %s675_s14, 4  ;;  %s607_s20 = int_to_ptr.vmem [resolvable:$false] %s606_s20 }
  0x40   : > { %512 = vmatpush1.bf16.msra.mxu0 %v511_v12  ;;  %s608_s25 = scalar_lea.vmem %s607_s20, 512  ;;  %p609_p8 = scmp.lt.s32.totalorder %s835_s30, %s607_s20 }
  0x41   : > { %239 = vmatprep.subr.mxu0 %v226_v13  ;;  %p605_p13 = pneg %p604_p12  ;;  %p610_p10 = scmp.lt.s32.totalorder %s608_s25, %s602_s13 }
  0x43   : > { %p611_p0 = por %p610_p10, %p609_p8 }
  0x44   : > { %240 = vmatpush1.msra.mxu0 %v225_v14 }
  0x45   : > { %498 = vmatmul.mubr.msk.f32.vlgmr.msra.gmra.mrb[0].mxu0 %vm227_vm0, %v216_v15  ;;  %p612_p2 = pnand %p611_p0, %p605_p13 }
 0x118   : > { %v297_v16 = vpop.f32.mrb[0].mxu0 }
 0x119   : > { %v302_v17 = vmax.f32 %v297_v16, 0.0  ;;  %v299_v18 = vpop.f32.mrb[1].mxu0 }
 0x11a   : > { %v303_v19 = vmax.f32 %v299_v18, 0.0 }
 0x11b   : > { %v355_v20 = vsel %vm354_vm1, %v302_v17, 0.0  ;;  %v307_v23 = vsel %vm306_vm2, %v302_v17, 0.0 }
 0x11c   : > { %v356_v21 = vsel %vm354_vm1, %v303_v19, 0.0  ;;  %v308_v24 = vsel %vm306_vm2, %v303_v19, 0.0 }
 0x11d   : > { %v357_v22 = vadd.f32 %v356_v21, %v355_v20  ;;  %v309_v25 = vadd.f32 %v308_v24, %v307_v23 }
 0x11f   : > { %358 = vadd.xlane.f32.xlu0 %v357_v22  ;;  %v305_v22 = vld [vmem:[%s882_s3] sm:$0xff] }
 0x123   : > { %310 = vadd.xlane.f32.xlu0 %v309_v25 }
 0x1ac   : > { %v359_v26 = vpop.xlane.xlu0 %358 }
 0x1ad   : > { %v361_v27 = vrot.slane %v359_v26, 4 }
 0x1af   : > { %v363_v28 = vsel %vm306_vm2, %v361_v27, 0.0 }
 0x1b0   : > { %v364_v29 = vrot.slane %v363_v28, 4  ;;  %v311_v30 = vpop.xlane.xlu0 %310 }
 0x1b1   : > { %v312_v31 = vsel %vm306_vm2, %v311_v30, 0.0 }
 0x1b2   : > { %v365_v32 = vadd.f32 %v364_v29, %v363_v28  ;;  %v313_v33 = vrot.slane %v312_v31, 4 }
 0x1b4   : > { %v366_v34 = vrot.slane %v365_v32, 2  ;;  %v314_v35 = vadd.f32 %v313_v33, %v312_v31 }
 0x1b6   : > { %v367_v36 = vadd.f32 %v366_v34, %v365_v32  ;;  %v315_v37 = vrot.slane %v314_v35, 2 }
 0x1b8   : > { %v368_v38 = vrot.slane %v367_v36, 1  ;;  %v316_v39 = vadd.f32 %v315_v37, %v314_v35 }
 0x1ba   : > { %v317_v40 = vrot.slane %v316_v39, 1  ;;  %v369_v41 = vadd.f32 %v368_v38, %v367_v36 }
 0x1bc   : > { %v318_v42 = vadd.f32 %v317_v40, %v316_v39  ;;  %v370_v43 = vmul.f32 0.0009765625, %v369_v41 }
 0x1be   : > { %v319_v44 = vmul.f32 0.0009765625, %v318_v42  ;;  %v371_v45 = vsub.f32 %v302_v17, %v370_v43  ;;  %v372_v46 = vsub.f32 %v303_v19, %v370_v43 }
 0x1c0   : > { %v373_v47 = vmul.f32 %v371_v45, %v371_v45  ;;  %v374_v48 = vmul.f32 %v372_v46, %v372_v46  ;;  %v320_v49 = vsub.f32 %v302_v17, %v319_v44  ;;  %v321_v50 = vsub.f32 %v303_v19, %v319_v44  ;;  %v304_v17 = vld [vmem:[%s881_s2] sm:$0xff] }
 0x1c2   : > { %v375_v51 = vsel %vm354_vm1, %v373_v47, 0.0  ;;  %v376_v52 = vsel %vm354_vm1, %v374_v48, 0.0  ;;  %v322_v53 = vmul.f32 %v320_v49, %v320_v49  ;;  %v323_v54 = vmul.f32 %v321_v50, %v321_v50 }
 0x1c3   : > { %v377_v55 = vadd.f32 %v376_v52, %v375_v51 }
 0x1c4   : > { %v324_v56 = vsel %vm306_vm2, %v322_v53, 0.0  ;;  %v325_v57 = vsel %vm306_vm2, %v323_v54, 0.0 }
 0x1c5   : > { %378 = vadd.xlane.f32.xlu1 %v377_v55  ;;  %v326_v58 = vadd.f32 %v325_v57, %v324_v56 }
 0x1c9   : > { %327 = vadd.xlane.f32.xlu1 %v326_v58 }
 0x252   : > { %v379_v60 = vpop.xlane.xlu1 %378 }
 0x253   : > { %v381_v61 = vrot.slane %v379_v60, 4 }
 0x255   : > { %v383_v62 = vsel %vm306_vm2, %v381_v61, 0.0 }
 0x256   : > { %v384_v63 = vrot.slane %v383_v62, 4  ;;  %v328_v0 = vpop.xlane.xlu1 %327 }
 0x257   : > { %v329_v1 = vsel %vm306_vm2, %v328_v0, 0.0 }
 0x258   : > { %v385_v2 = vadd.f32 %v384_v63, %v383_v62  ;;  %v330_v3 = vrot.slane %v329_v1, 4 }
 0x25a   : > { %v386_v4 = vrot.slane %v385_v2, 2  ;;  %v331_v5 = vadd.f32 %v330_v3, %v329_v1 }
 0x25c   : > { %v387_v6 = vadd.f32 %v386_v4, %v385_v2  ;;  %v332_v7 = vrot.slane %v331_v5, 2 }
 0x25e   : > { %v388_v8 = vrot.slane %v387_v6, 1  ;;  %v333_v9 = vadd.f32 %v332_v7, %v331_v5 }
 0x260   : > { %v389_v10 = vadd.f32 %v388_v8, %v387_v6  ;;  %v334_v11 = vrot.slane %v333_v9, 1 }
 0x262   : > { %v390_v12 = vmul.f32 0.0009765625, %v389_v10  ;;  %v335_v13 = vadd.f32 %v334_v11, %v333_v9 }
 0x264   : > { %v391_v14 = vadd.f32 1e-05, %v390_v12  ;;  %v336_v15 = vmul.f32 0.0009765625, %v335_v13 }
 0x266   : > { %568 = vrsqrt.f32 %v391_v14  ;;  %v337_v16 = vadd.f32 1e-05, %v336_v15 }
 0x268   : > { %570 = vrsqrt.f32 %v337_v16 }
 0x270   : > { %v569_v18 = vpop.eup %568 }
 0x271   : > { %v393_v19 = vmul.f32 %v569_v18, %v304_v17 }
 0x272   : > { %v571_v20 = vpop.eup %570 }
 0x273   : > { %396 = vperm.xlu1 %567, %v393_v19   ;;  %v339_v21 = vmul.f32 %v571_v20, %v304_v17 }
 0x275   : > { %342 = vperm.xlu0 %566, %v339_v21  }
 0x277   : > { %349 = vperm.xlu1 %567, %v305_v22  }
 0x2f2   : > { %v397_v23 = vpop.permute.xlu1 %396 }
 0x2f3   : > { %v399_v25 = vmul.f32 %v397_v23, %v371_v45  ;;  %v400_v26 = vmul.f32 %v397_v23, %v372_v46 }
 0x2f4   : > { %v343_v24 = vpop.permute.xlu0 %342 }
 0x2f5   : > { %v345_v27 = vmul.f32 %v343_v24, %v320_v49  ;;  %v346_v28 = vmul.f32 %v343_v24, %v321_v50 }
 0x2f6   : > { %v350_v29 = vpop.permute.xlu1 %349 }
 0x2f7   : > { %v352_v30 = vadd.f32 %v350_v29, %v345_v27  ;;  %v353_v31 = vadd.f32 %v350_v29, %v346_v28  ;;  %v401_v32 = vadd.f32 %v399_v25, %v350_v29  ;;  %v402_v33 = vadd.f32 %v400_v26, %v350_v29 }
 0x2f9   : > { %v403_v34 = vsel %vm306_vm2, %v352_v30, %v401_v32  ;;  %v404_v35 = vsel %vm306_vm2, %v353_v31, %v402_v33 }
 0x2fa   : > { %405 = vst [vmem:[%s215_s29] sm:$0xff] %v403_v34  ;;  %406 = vst [vmem:[%s215_s29 + $0x8] sm:$0xff] %v404_v35 }
 0x2fb   : > { %615 = shalt.err (!%p612_p2)
}
 0x2fc   : > { %s616_s12 = scalar_lea.hbm %s833_s9, 256  ;;  %s620_s10 = scalar_lea.hbm %s883_s4, 512 }
 0x2fd   : > { %p617_p4 = scmp.ne.s32.totalorder %s833_s9, %s616_s12  ;;  %p621_p9 = scmp.lt.u32.totalorder %s833_s9, %s883_s4 }
 0x2fe   : > { %p622_p1 = scmp.lt.u32.totalorder %s620_s10, %s616_s12  ;;  %p624_p6 = scmp.lt.u32.totalorder %s616_s12, %s833_s9 }
 0x2ff   : > { %p618_p5 = pnand %p617_p4, %p889_p11 }
 0x300   : > { %p623_p3 = por %p622_p1, %p621_p9 }
 0x301   : > { %p619_p7 = pneg %p618_p5 }
 0x302   : > { %p625_p12 = por %p624_p6, %p623_p3 }
 0x304   : > { %p626_p13 = pnand %p625_p12, %p619_p7 }
 0x306   : > { %629 = shalt.err (!%p626_p13)
}
 0x307   : > { %518 = dma.vmem_to_hbm [thread:$0]  (%p889_p11), %s835_s30, 256, %s833_s9, %s408_s19  }
 0x308 PF: > { %s434_s23 = sand.u32 1, %s656_s15   ;;  %p890_p8 = scmp.ne.s32.totalorder %s887_s27, 0 }
 0x309   : > { %p891_p10 = scmp.ge.s32.totalorder %s668_s18, 2  ;;  %s435_s28 = scalar_lea.sflag [#allocation4], %s434_s23 }
 0x30b   : > { %p525_p0 = pnand %p891_p10, %p890_p8 }
 0x30d   : > { %651 = dma.done.wait (!%p525_p0), %s435_s28, 256  }
 0x30e   : > { %653 = vsyncadd (!%p525_p0), %s435_s28, 4294967040  ;;  %p17_p2 = scmp.ge.s32.totalorder %s726_s21, 4   ;;  %s892_s15 = smov %s660_s16 }
 0x30f   : > { %s893_s16 = smov %s664_s17  ;;  %s894_s17 = smov %s738_s24 }
 0x310   : > { %s895_s18 = smov %s726_s21  ;;  %19 = sbr.rel (!%p17_p2) target bundleno = 5 (0x5), region = 81 }
 0x317   :  { %440 = vsyncpa [#allocation3], 1 }
 0x318   :  { %442 = vsyncpa [#allocation3 + $0x1], 1 }
 0x319   :  { %443 = vsyncpa [#allocation4], 1 }
 0x31a   :  { %445 = vsyncpa [#allocation4 + $0x1], 1 }

</bundles_post_ra>
